<compile_context>
chip_gen: v7x
topology: tpu7x:2x2x1
jax: 0.10.0
libtpu: 0.0.40
codegen_flags: <defaults>
</compile_context>

<pallas_src>
import functools

import jax
import jax.numpy as jnp
from jax.experimental import pallas as pl
from jax.experimental.pallas import tpu as pltpu

EPS = 1e-5  # torch.nn.BatchNorm1d default eps


# ----------------------------- hardware-aware sizing ---------------------------------------
def _vmem_capacity_bytes():
    try:
        return int(pltpu.get_tpu_info().vmem_capacity_bytes)
    except Exception:
        return 64 * 1024 * 1024  # conservative fallback (v7x per-TC VMEM)


def _round_up(n, m):
    return ((n + m - 1) // m) * m


def _sublane_align(dtype):
    # f32 -> 8, bf16 -> 16, int8/fp8 -> 32 (packed sublanes).
    return max(8, 32 // jnp.dtype(dtype).itemsize)


def _pick_t_tile(b_rows, T, H, dtype, budget_bytes):
    """Largest aligned time-tile whose (b_rows, t_tile, H) block stays within budget_bytes."""
    align = _sublane_align(dtype)
    itemsize = jnp.dtype(dtype).itemsize
    rows = budget_bytes // max(1, b_rows * H * itemsize)
    rows = max(align, (rows // align) * align)
    return min(rows, _round_up(T, align))


# ----------------------------- shared math (kernel + reference) -----------------------------
def _bn_train(v, g, b):
    # BatchNorm1d, training-mode forward: per-feature batch mean and biased variance over dim 0.
    mu = jnp.mean(v, axis=0, keepdims=True)
    var = jnp.mean((v - mu) ** 2, axis=0, keepdims=True)
    return (v - mu) * jax.lax.rsqrt(var + EPS) * g + b


def _resblock(v, bn1g, bn1b, w1, b1, w2, b2, bn2g, bn2b):
    # ResBlockBatchNorm.forward
    h = _bn_train(v, bn1g, bn1b)
    z = jnp.maximum(jnp.dot(h, w1, preferred_element_type=jnp.float32) + b1, 0.0)
    z = jnp.dot(z, w2, preferred_element_type=jnp.float32) + b2
    return _bn_train(z, bn2g, bn2b) + h


def _mlp_from_packed(x, w1s, w2s, proj_w, head_w, vec_h, vec_hid, vec_p):
    """DeepMLPResNet (resblocks + output Linear) then ReLU + prediction_head, on (B, H)."""
    num_layers = w1s.shape[0]
    for i in range(num_layers):  # static unroll; dropout p=0 -> identity
        r = 5 * i
        x = _resblock(
            x,
            vec_h[r + 0:r + 1], vec_h[r + 1:r + 2],   # bn1 gamma / beta
            w1s[i], vec_hid[i:i + 1],                 # linear_1 W, b
            w2s[i], vec_h[r + 4:r + 5],               # linear_2 W, b
            vec_h[r + 2:r + 3], vec_h[r + 3:r + 4],   # bn2 gamma / beta
        )
    x = jnp.dot(x, proj_w, preferred_element_type=jnp.float32) + vec_p[0:1]   # proj Linear
    x = jnp.maximum(x, 0.0)                                                   # classifier ReLU
    return jnp.dot(x, head_w, preferred_element_type=jnp.float32) + vec_p[1:2]  # prediction head


# ----------------------------- fused kernel: stream-pool + MLP epilogue ---------------------
def _fused_kernel(x_ref, w1s_ref, w2s_ref, proj_w_ref, head_w_ref,
                  vec_h_ref, vec_hid_ref, vec_p_ref, out_ref, acc_ref, *, inv_t):
    t = pl.program_id(0)

    @pl.when(t == 0)
    def _():
        acc_ref[...] = jnp.zeros_like(acc_ref)

    # Running f32 sum over the streamed time tiles (padded rows are zero -> no effect).
    acc_ref[...] += jnp.sum(x_ref[...].astype(jnp.float32), axis=1)

    @pl.when(t == pl.num_programs(0) - 1)
    def _():
        pooled = acc_ref[...] * inv_t                     # mean over the ORIGINAL T
        out_ref[...] = _mlp_from_packed(
            pooled, w1s_ref[...], w2s_ref[...], proj_w_ref[...], head_w_ref[...],
            vec_h_ref[...], vec_hid_ref[...], vec_p_ref[...])


def fused_forward(x, packed, t_tile=None):
    w1s, w2s, proj_w, head_w, vec_h, vec_hid, vec_p = packed
    B, T, H = x.shape
    L, _, nhid = w1s.shape
    nproj = proj_w.shape[1]

    vmem_cap = _vmem_capacity_bytes()
    vmem_limit = max(32 << 20, min((vmem_cap * 3) // 4, 100 << 20))
    x_budget = max(1 << 20, vmem_cap // 6)                # per streamed buffer

    align = _sublane_align(x.dtype)
    if t_tile is None:
        t_tile = _pick_t_tile(B, T, H, x.dtype, x_budget)
    else:
        t_tile = _round_up(int(t_tile), align)

    T_pad = _round_up(max(T, t_tile), t_tile)
    if T_pad != T:
        x = jnp.pad(x, ((0, 0), (0, T_pad - T), (0, 0)))  # zero rows don't change the sum

    steps = T_pad // t_tile
    tile_bytes = B * t_tile * H * x.dtype.itemsize
    x_index = lambda t: (0, t, 0)
    if steps >= 4 and tile_bytes < (512 << 10):
        # Tiles were forced small: deepen the pipeline instead of exposing DMA setup.
        x_spec = pl.BlockSpec((B, t_tile, H), x_index, pipeline_mode=pl.Buffered(3))
    else:
        x_spec = pl.BlockSpec((B, t_tile, H), x_index)

    const2 = lambda t: (0, 0)
    const3 = lambda t: (0, 0, 0)
    kernel = functools.partial(_fused_kernel, inv_t=1.0 / T)

    flops = B * T_pad * H + 2 * B * (2 * L * H * nhid + H * nproj + nproj * nproj)
    w_bytes = 4 * sum(int(p.size) for p in packed)
    return pl.pallas_call(
        kernel,
        out_shape=jax.ShapeDtypeStruct((B, nproj), jnp.float32),
        grid=(steps,),
        in_specs=[
            x_spec,
            pl.BlockSpec((L, H, nhid), const3),       # w1s   (resident, constant index)
            pl.BlockSpec((L, nhid, H), const3),       # w2s
            pl.BlockSpec((H, nproj), const2),         # proj_w
            pl.BlockSpec((nproj, nproj), const2),     # head_w
            pl.BlockSpec((5 * L, H), const2),         # bn params + linear_2 biases
            pl.BlockSpec((L, nhid), const2),          # linear_1 biases
            pl.BlockSpec((2, nproj), const2),         # proj / head biases
        ],
        out_specs=pl.BlockSpec((B, nproj), const2),
        scratch_shapes=[pltpu.VMEM((B, H), jnp.float32)],
        compiler_params=pltpu.CompilerParams(
            dimension_semantics=("arbitrary",),
            vmem_limit_bytes=vmem_limit,
        ),
        cost_estimate=pl.CostEstimate(
            flops=flops,
            transcendentals=2 * L * H,
            bytes_accessed=x.size * x.dtype.itemsize + w_bytes + B * nproj * 4,
        ),
    )(x, w1s, w2s, proj_w, head_w, vec_h, vec_hid, vec_p)


# ----------------------------- split path: pooling kernel + head kernel ---------------------
def _mean_pool_kernel(x_ref, o_ref, *, inv_t):
    # x_ref: (1, Bc, t_tile, H); o_ref: (1, Bc, H) resident across the time axis.
    t = pl.program_id(1)

    @pl.when(t == 0)
    def _():
        o_ref[...] = jnp.zeros_like(o_ref)

    o_ref[...] += jnp.sum(x_ref[...].astype(jnp.float32), axis=2)

    @pl.when(t == pl.num_programs(1) - 1)
    def _():
        o_ref[...] = o_ref[...] * inv_t


def mean_pool_time(x, t_tile=None):
    B, T, H = x.shape
    vmem_cap = _vmem_capacity_bytes()
    vmem_limit = max(32 << 20, min((vmem_cap * 3) // 4, 100 << 20))
    x_budget = max(1 << 20, vmem_cap // 6)

    # v7x megacore: split the batch into two "parallel" tiles when it divides evenly.  On
    # single-TC chips this is just a 2-iteration serial loop (negligible with large tiles).
    n_par = 2 if (B % 2 == 0 and B >= 2) else 1
    Bc = B // n_par

    align = _sublane_align(x.dtype)
    if t_tile is None:
        t_tile = _pick_t_tile(Bc, T, H, x.dtype, x_budget)
    else:
        t_tile = _round_up(int(t_tile), align)
    T_pad = _round_up(max(T, t_tile), t_tile)
    if T_pad != T:
        x = jnp.pad(x, ((0, 0), (0, T_pad - T), (0, 0)))

    xr = x.reshape(n_par, Bc, T_pad, H)
    steps = T_pad // t_tile
    kernel = functools.partial(_mean_pool_kernel, inv_t=1.0 / T)
    pooled = pl.pallas_call(
        kernel,
        out_shape=jax.ShapeDtypeStruct((n_par, Bc, H), jnp.float32),
        grid=(n_par, steps),
        in_specs=[pl.BlockSpec((1, Bc, t_tile, H), lambda p, t: (p, 0, t, 0))],
        out_specs=pl.BlockSpec((1, Bc, H), lambda p, t: (p, 0, 0)),
        compiler_params=pltpu.CompilerParams(
            dimension_semantics=("parallel", "arbitrary"),
            vmem_limit_bytes=vmem_limit,
        ),
        cost_estimate=pl.CostEstimate(
            flops=B * T_pad * H,
            transcendentals=0,
            bytes_accessed=xr.size * xr.dtype.itemsize + B * H * 4,
        ),
    )(xr)
    return pooled.reshape(B, H)


def _mlp_kernel(pooled_ref, w1s_ref, w2s_ref, proj_w_ref, head_w_ref,
                vec_h_ref, vec_hid_ref, vec_p_ref, out_ref):
    out_ref[...] = _mlp_from_packed(
        pooled_ref[...], w1s_ref[...], w2s_ref[...], proj_w_ref[...], head_w_ref[...],
        vec_h_ref[...], vec_hid_ref[...], vec_p_ref[...])


def mlp_head(pooled, packed):
    w1s, w2s, proj_w, head_w, vec_h, vec_hid, vec_p = packed
    B, H = pooled.shape
    L, _, nhid = w1s.shape
    nproj = proj_w.shape[1]
    vmem_limit = max(32 << 20, min((_vmem_capacity_bytes() * 3) // 4, 100 << 20))
    flops = 2 * B * (2 * L * H * nhid + H * nproj + nproj * nproj)
    return pl.pallas_call(
        _mlp_kernel,
        out_shape=jax.ShapeDtypeStruct((B, nproj), jnp.float32),
        in_specs=[pl.BlockSpec(memory_space=pltpu.MemorySpace.VMEM)] * 8,
        out_specs=pl.BlockSpec(memory_space=pltpu.MemorySpace.VMEM),
        compiler_params=pltpu.CompilerParams(vmem_limit_bytes=vmem_limit),
        cost_estimate=pl.CostEstimate(
            flops=flops,
            transcendentals=2 * L * H,
            bytes_accessed=4 * (pooled.size + sum(int(p.size) for p in packed) + B * nproj),
        ),
    )(pooled, w1s, w2s, proj_w, head_w, vec_h, vec_hid, vec_p)


# ----------------------------- full forward ------------------------------------------------
@functools.partial(jax.jit, static_argnames=("t_tile", "fuse_head"))
def audio_emotion_classifier(x, packed, t_tile=None, fuse_head=True):
    if fuse_head:
        return fused_forward(x, packed, t_tile=t_tile)
    pooled = mean_pool_time(x, t_tile=t_tile)
    return mlp_head(pooled, packed)


# ----------------------------- parameters --------------------------------------------------
def init_params(key, backbone_hidden, nhidden, nproj, num_layers=2):
    """Deterministic params. Linear init mimics PyTorch's U(-1/sqrt(fan_in), 1/sqrt(fan_in));
    BatchNorm gamma=1, beta=0."""
    def linear(k, fan_in, fan_out):
        k1, k2 = jax.random.split(k)
        bound = 1.0 / float(fan_in) ** 0.5
        w = jax.random.uniform(k1, (fan_in, fan_out), jnp.float32, -bound, bound)
        b = jax.random.uniform(k2, (1, fan_out), jnp.float32, -bound, bound)
        return w, b

    keys = jax.random.split(key, num_layers * 2 + 2)
    blocks = []
    for i in range(num_layers):
        w1, b1 = linear(keys[2 * i], backbone_hidden, nhidden)
        w2, b2 = linear(keys[2 * i + 1], nhidden, backbone_hidden)
        blocks.append(dict(
            bn1g=jnp.ones((1, backbone_hidden), jnp.float32),
            bn1b=jnp.zeros((1, backbone_hidden), jnp.float32),
            w1=w1, b1=b1, w2=w2, b2=b2,
            bn2g=jnp.ones((1, backbone_hidden), jnp.float32),
            bn2b=jnp.zeros((1, backbone_hidden), jnp.float32),
        ))
    proj_w, proj_b = linear(keys[-2], backbone_hidden, nproj)   # DeepMLPResNet output layer
    head_w, head_b = linear(keys[-1], nproj, nproj)             # prediction head
    return dict(blocks=blocks, proj_w=proj_w, proj_b=proj_b, head_w=head_w, head_b=head_b)


def pack_params(params):
    """Pack the 20 natural parameters into 7 kernel inputs (fewer DMA descriptors / buffers)."""
    blocks = params["blocks"]
    w1s = jnp.stack([b["w1"] for b in blocks])     # (L, H, nhid)
    w2s = jnp.stack([b["w2"] for b in blocks])     # (L, nhid, H)
    vec_h = jnp.concatenate(
        [jnp.concatenate([b["bn1g"], b["bn1b"], b["bn2g"], b["bn2b"], b["b2"]], axis=0)
         for b in blocks], axis=0)                 # (5L, H)
    vec_hid = jnp.concatenate([b["b1"] for b in blocks], axis=0)              # (L, nhid)
    vec_p = jnp.concatenate([params["proj_b"], params["head_b"]], axis=0)     # (2, nproj)
    return (w1s, w2s, params["proj_w"], params["head_w"], vec_h, vec_hid, vec_p)


def reference_forward(x, params):
    """Pure-JAX reference of the same forward pass."""
    h = jnp.mean(x.astype(jnp.float32), axis=1)
    for b in params["blocks"]:
        h = _resblock(h, b["bn1g"], b["bn1b"], b["w1"], b["b1"],
                      b["w2"], b["b2"], b["bn2g"], b["bn2b"])
    h = jnp.dot(h, params["proj_w"]) + params["proj_b"]
    h = jnp.maximum(h, 0.0)
    return jnp.dot(h, params["head_w"]) + params["head_b"]


if __name__ == "__main__":
    # Small shapes consistent with the module (scaled-down defaults 768/256/128).
    B, T, H, NHID, NPROJ = 2, 32, 32, 64, 16

    key = jax.random.PRNGKey(0)
    kx, kp = jax.random.split(key)
    x = jax.random.normal(kx, (B, T, H), jnp.float32)
    params = init_params(kp, backbone_hidden=H, nhidden=NHID, nproj=NPROJ, num_layers=2)
    packed = pack_params(params)

    ref = reference_forward(x, params)

    # 1) Default fused path (auto tile: a single grid step at this tiny size).
    out = audio_emotion_classifier(x, packed)
    jax.block_until_ready(out)
    assert out.shape == (B, NPROJ), out.shape
    assert jnp.allclose(out, ref, atol=1e-4, rtol=1e-4), "fused kernel mismatch (auto tile)"

    # 2) Fused path, forced multi-step streaming (exercises the resident accumulator and the
    #    deeper-buffered small-tile pipeline).
    out2 = audio_emotion_classifier(x, packed, t_tile=8)
    jax.block_until_ready(out2)
    assert jnp.allclose(out2, ref, atol=1e-4, rtol=1e-4), "fused kernel mismatch (t_tile=8)"

    # 3) Two-kernel path (batch-parallel pooling grid + separate MLP head) with a ragged T
    #    that exercises the zero-pad / 1-over-original-T path.
    x3 = jax.random.normal(kx, (B, 37, H), jnp.float32)
    ref3 = reference_forward(x3, params)
    out3 = audio_emotion_classifier(x3, packed, t_tile=8, fuse_head=False)
    jax.block_until_ready(out3)
    assert jnp.allclose(out3, ref3, atol=1e-4, rtol=1e-4), "split kernel mismatch (T=37)"

    print("KERNEL_OK")
</pallas_src>

<mosaic_0001>
module attributes {stable_mosaic.version = 11 : i64} {
  func.func @_fused_kernel(%arg0: i32, %arg1: memref<2x32x32xf32, #tpu.memory_space<vmem>>, %arg2: memref<2x32x64xf32, #tpu.memory_space<vmem>>, %arg3: memref<2x64x32xf32, #tpu.memory_space<vmem>>, %arg4: memref<32x16xf32, #tpu.memory_space<vmem>>, %arg5: memref<16x16xf32, #tpu.memory_space<vmem>>, %arg6: memref<10x32xf32, #tpu.memory_space<vmem>>, %arg7: memref<2x64xf32, #tpu.memory_space<vmem>>, %arg8: memref<2x16xf32, #tpu.memory_space<vmem>>, %arg9: memref<2x16xf32, #tpu.memory_space<vmem>>, %arg10: memref<2x32xf32, #tpu.memory_space<vmem>>) attributes {dimension_semantics = [#tpu.dimension_semantics<arbitrary>], iteration_bounds = array<i64: 1>, scalar_prefetch = 0 : i64, scratch_operands = 1 : i64, tpu.core_type = #tpu.core_type<tc>, window_params = [{transform_indices = @transform_0, window_bounds = array<i64: 2, 32, 32>}, {pipeline_mode = #tpu.pipeline_mode<synchronous>, transform_indices = @transform_1, window_bounds = array<i64: 2, 32, 64>}, {pipeline_mode = #tpu.pipeline_mode<synchronous>, transform_indices = @transform_2, window_bounds = array<i64: 2, 64, 32>}, {pipeline_mode = #tpu.pipeline_mode<synchronous>, transform_indices = @transform_3, window_bounds = array<i64: 32, 16>}, {pipeline_mode = #tpu.pipeline_mode<synchronous>, transform_indices = @transform_4, window_bounds = array<i64: 16, 16>}, {pipeline_mode = #tpu.pipeline_mode<synchronous>, transform_indices = @transform_5, window_bounds = array<i64: 10, 32>}, {pipeline_mode = #tpu.pipeline_mode<synchronous>, transform_indices = @transform_6, window_bounds = array<i64: 2, 64>}, {pipeline_mode = #tpu.pipeline_mode<synchronous>, transform_indices = @transform_7, window_bounds = array<i64: 2, 16>}, {pipeline_mode = #tpu.pipeline_mode<synchronous>, transform_indices = @transform_8, window_bounds = array<i64: 2, 16>}]} {
    %c0_i32 = arith.constant 0 : i32
    %0 = arith.cmpi eq, %arg0, %c0_i32 : i32
    %1 = arith.extui %0 : i1 to i32
    %c0_i32_0 = arith.constant 0 : i32
    %2 = arith.cmpi ne, %1, %c0_i32_0 : i32
    scf.if %2 {
      %cst_9 = arith.constant 0.000000e+00 : f32
      %11 = vector.broadcast %cst_9 : f32 to vector<2x32xf32>
      %c0_10 = arith.constant 0 : index
      %c0_11 = arith.constant 0 : index
      %12 = vector.load %arg10[%c0_10, %c0_11] : memref<2x32xf32, #tpu.memory_space<vmem>>, vector<2x32xf32>
      tpu.vector_store %arg10[%c0_10, %c0_11], %11 {strides = array<i32>} : memref<2x32xf32, #tpu.memory_space<vmem>>, vector<2x32xf32>,
    } else {
    }
    %c0 = arith.constant 0 : index
    %c0_1 = arith.constant 0 : index
    %3 = vector.load %arg10[%c0, %c0_1] : memref<2x32xf32, #tpu.memory_space<vmem>>, vector<2x32xf32>
    %c0_2 = arith.constant 0 : index
    %c0_3 = arith.constant 0 : index
    %c0_4 = arith.constant 0 : index
    %4 = vector.load %arg1[%c0_2, %c0_3, %c0_4] : memref<2x32x32xf32, #tpu.memory_space<vmem>>, vector<2x32x32xf32>
    %cst = arith.constant dense<0.000000e+00> : vector<2x32xf32>
    %5 = vector.multi_reduction <add>, %4, %cst [1] : vector<2x32x32xf32> to vector<2x32xf32>
    %6 = arith.addf %3, %5 : vector<2x32xf32>
    %c0_5 = arith.constant 0 : index
    %c0_6 = arith.constant 0 : index
    %7 = vector.load %arg10[%c0_5, %c0_6] : memref<2x32xf32, #tpu.memory_space<vmem>>, vector<2x32xf32>
    tpu.vector_store %arg10[%c0_5, %c0_6], %6 {strides = array<i32>} : memref<2x32xf32, #tpu.memory_space<vmem>>, vector<2x32xf32>,
    %c0_i32_7 = arith.constant 0 : i32
    %8 = arith.cmpi eq, %arg0, %c0_i32_7 : i32
    %9 = arith.extui %8 : i1 to i32
    %c0_i32_8 = arith.constant 0 : i32
    %10 = arith.cmpi ne, %9, %c0_i32_8 : i32
    scf.if %10 {
      %c0_9 = arith.constant 0 : index
      %c0_10 = arith.constant 0 : index
      %11 = vector.load %arg10[%c0_9, %c0_10] : memref<2x32xf32, #tpu.memory_space<vmem>>, vector<2x32xf32>
      %cst_11 = arith.constant 3.125000e-02 : f32
      %12 = vector.broadcast %cst_11 : f32 to vector<2x32xf32>
      %13 = arith.mulf %11, %12 : vector<2x32xf32>
      %c0_12 = arith.constant 0 : index
      %c0_13 = arith.constant 0 : index
      %c0_14 = arith.constant 0 : index
      %14 = vector.load %arg2[%c0_12, %c0_13, %c0_14] : memref<2x32x64xf32, #tpu.memory_space<vmem>>, vector<2x32x64xf32>
      %c0_15 = arith.constant 0 : index
      %c0_16 = arith.constant 0 : index
      %c0_17 = arith.constant 0 : index
      %15 = vector.load %arg3[%c0_15, %c0_16, %c0_17] : memref<2x64x32xf32, #tpu.memory_space<vmem>>, vector<2x64x32xf32>
      %c0_18 = arith.constant 0 : index
      %c0_19 = arith.constant 0 : index
      %16 = vector.load %arg4[%c0_18, %c0_19] : memref<32x16xf32, #tpu.memory_space<vmem>>, vector<32x16xf32>
      %c0_20 = arith.constant 0 : index
      %c0_21 = arith.constant 0 : index
      %17 = vector.load %arg5[%c0_20, %c0_21] : memref<16x16xf32, #tpu.memory_space<vmem>>, vector<16x16xf32>
      %c0_22 = arith.constant 0 : index
      %c0_23 = arith.constant 0 : index
      %18 = vector.load %arg6[%c0_22, %c0_23] : memref<10x32xf32, #tpu.memory_space<vmem>>, vector<10x32xf32>
      %c0_24 = arith.constant 0 : index
      %c0_25 = arith.constant 0 : index
      %19 = vector.load %arg7[%c0_24, %c0_25] : memref<2x64xf32, #tpu.memory_space<vmem>>, vector<2x64xf32>
      %c0_26 = arith.constant 0 : index
      %c0_27 = arith.constant 0 : index
      %20 = vector.load %arg8[%c0_26, %c0_27] : memref<2x16xf32, #tpu.memory_space<vmem>>, vector<2x16xf32>
      %21 = vector.extract_strided_slice %18 {offsets = [0, 0], sizes = [1, 32], strides = [1, 1]} : vector<10x32xf32> to vector<1x32xf32>
      %22 = vector.extract_strided_slice %18 {offsets = [1, 0], sizes = [1, 32], strides = [1, 1]} : vector<10x32xf32> to vector<1x32xf32>
      %23 = vector.extract_strided_slice %14 {offsets = [0, 0, 0], sizes = [1, 32, 64], strides = [1, 1, 1]} : vector<2x32x64xf32> to vector<1x32x64xf32>
      %24 = vector.shape_cast %23 : vector<1x32x64xf32> to vector<32x64xf32>
      %25 = vector.extract_strided_slice %19 {offsets = [0, 0], sizes = [1, 64], strides = [1, 1]} : vector<2x64xf32> to vector<1x64xf32>
      %26 = vector.extract_strided_slice %15 {offsets = [0, 0, 0], sizes = [1, 64, 32], strides = [1, 1, 1]} : vector<2x64x32xf32> to vector<1x64x32xf32>
      %27 = vector.shape_cast %26 : vector<1x64x32xf32> to vector<64x32xf32>
      %28 = vector.extract_strided_slice %18 {offsets = [4, 0], sizes = [1, 32], strides = [1, 1]} : vector<10x32xf32> to vector<1x32xf32>
      %29 = vector.extract_strided_slice %18 {offsets = [2, 0], sizes = [1, 32], strides = [1, 1]} : vector<10x32xf32> to vector<1x32xf32>
      %30 = vector.extract_strided_slice %18 {offsets = [3, 0], sizes = [1, 32], strides = [1, 1]} : vector<10x32xf32> to vector<1x32xf32>
      %cst_28 = arith.constant dense<0.000000e+00> : vector<32xf32>
      %31 = vector.multi_reduction <add>, %13, %cst_28 [0] : vector<2x32xf32> to vector<32xf32>
      %32 = vector.shape_cast %31 : vector<32xf32> to vector<1x32xf32>
      %cst_29 = arith.constant 2.000000e+00 : f32
      %33 = vector.broadcast %cst_29 : f32 to vector<1x32xf32>
      %34 = arith.divf %32, %33 : vector<1x32xf32>
      %35 = vector.broadcast %34 : vector<1x32xf32> to vector<2x32xf32>
      %36 = arith.subf %13, %35 : vector<2x32xf32>
      %37 = arith.mulf %36, %36 : vector<2x32xf32>
      %cst_30 = arith.constant dense<0.000000e+00> : vector<32xf32>
      %38 = vector.multi_reduction <add>, %37, %cst_30 [0] : vector<2x32xf32> to vector<32xf32>
      %39 = vector.shape_cast %38 : vector<32xf32> to vector<1x32xf32>
      %cst_31 = arith.constant 2.000000e+00 : f32
      %40 = vector.broadcast %cst_31 : f32 to vector<1x32xf32>
      %41 = arith.divf %39, %40 : vector<1x32xf32>
      %42 = vector.broadcast %34 : vector<1x32xf32> to vector<2x32xf32>
      %43 = arith.subf %13, %42 : vector<2x32xf32>
      %cst_32 = arith.constant 9.99999974E-6 : f32
      %44 = vector.broadcast %cst_32 : f32 to vector<1x32xf32>
      %45 = arith.addf %41, %44 : vector<1x32xf32>
      %46 = math.rsqrt %45 : vector<1x32xf32>
      %47 = vector.broadcast %46 : vector<1x32xf32> to vector<2x32xf32>
      %48 = arith.mulf %43, %47 : vector<2x32xf32>
      %49 = vector.broadcast %21 : vector<1x32xf32> to vector<2x32xf32>
      %50 = arith.mulf %48, %49 : vector<2x32xf32>
      %51 = vector.broadcast %22 : vector<1x32xf32> to vector<2x32xf32>
      %52 = arith.addf %50, %51 : vector<2x32xf32>
      %cst_33 = arith.constant dense<0.000000e+00> : vector<2x64xf32>
      %53 = tpu.matmul %52, %24, %cst_33 {dimension_numbers = #tpu.dot_dimension_numbers<[1], [0], [0], [1], [0, 0, 1, 1], [], []>} : vector<2x32xf32>, vector<32x64xf32>, vector<2x64xf32> -> vector<2x64xf32>
      %54 = vector.broadcast %25 : vector<1x64xf32> to vector<2x64xf32>
      %55 = arith.addf %53, %54 : vector<2x64xf32>
      %cst_34 = arith.constant 0.000000e+00 : f32
      %56 = vector.broadcast %cst_34 : f32 to vector<2x64xf32>
      %57 = arith.maximumf %55, %56 : vector<2x64xf32>
      %cst_35 = arith.constant dense<0.000000e+00> : vector<2x32xf32>
      %58 = tpu.matmul %57, %27, %cst_35 {dimension_numbers = #tpu.dot_dimension_numbers<[1], [0], [0], [1], [0, 0, 1, 1], [], []>} : vector<2x64xf32>, vector<64x32xf32>, vector<2x32xf32> -> vector<2x32xf32>
      %59 = vector.broadcast %28 : vector<1x32xf32> to vector<2x32xf32>
      %60 = arith.addf %58, %59 : vector<2x32xf32>
      %cst_36 = arith.constant dense<0.000000e+00> : vector<32xf32>
      %61 = vector.multi_reduction <add>, %60, %cst_36 [0] : vector<2x32xf32> to vector<32xf32>
      %62 = vector.shape_cast %61 : vector<32xf32> to vector<1x32xf32>
      %cst_37 = arith.constant 2.000000e+00 : f32
      %63 = vector.broadcast %cst_37 : f32 to vector<1x32xf32>
      %64 = arith.divf %62, %63 : vector<1x32xf32>
      %65 = vector.broadcast %64 : vector<1x32xf32> to vector<2x32xf32>
      %66 = arith.subf %60, %65 : vector<2x32xf32>
      %67 = arith.mulf %66, %66 : vector<2x32xf32>
      %cst_38 = arith.constant dense<0.000000e+00> : vector<32xf32>
      %68 = vector.multi_reduction <add>, %67, %cst_38 [0] : vector<2x32xf32> to vector<32xf32>
      %69 = vector.shape_cast %68 : vector<32xf32> to vector<1x32xf32>
      %cst_39 = arith.constant 2.000000e+00 : f32
      %70 = vector.broadcast %cst_39 : f32 to vector<1x32xf32>
      %71 = arith.divf %69, %70 : vector<1x32xf32>
      %72 = vector.broadcast %64 : vector<1x32xf32> to vector<2x32xf32>
      %73 = arith.subf %60, %72 : vector<2x32xf32>
      %cst_40 = arith.constant 9.99999974E-6 : f32
      %74 = vector.broadcast %cst_40 : f32 to vector<1x32xf32>
      %75 = arith.addf %71, %74 : vector<1x32xf32>
      %76 = math.rsqrt %75 : vector<1x32xf32>
      %77 = vector.broadcast %76 : vector<1x32xf32> to vector<2x32xf32>
      %78 = arith.mulf %73, %77 : vector<2x32xf32>
      %79 = vector.broadcast %29 : vector<1x32xf32> to vector<2x32xf32>
      %80 = arith.mulf %78, %79 : vector<2x32xf32>
      %81 = vector.broadcast %30 : vector<1x32xf32> to vector<2x32xf32>
      %82 = arith.addf %80, %81 : vector<2x32xf32>
      %83 = arith.addf %82, %52 : vector<2x32xf32>
      %84 = vector.extract_strided_slice %18 {offsets = [5, 0], sizes = [1, 32], strides = [1, 1]} : vector<10x32xf32> to vector<1x32xf32>
      %85 = vector.extract_strided_slice %18 {offsets = [6, 0], sizes = [1, 32], strides = [1, 1]} : vector<10x32xf32> to vector<1x32xf32>
      %86 = vector.extract_strided_slice %14 {offsets = [1, 0, 0], sizes = [1, 32, 64], strides = [1, 1, 1]} : vector<2x32x64xf32> to vector<1x32x64xf32>
      %87 = vector.shape_cast %86 : vector<1x32x64xf32> to vector<32x64xf32>
      %88 = vector.extract_strided_slice %19 {offsets = [1, 0], sizes = [1, 64], strides = [1, 1]} : vector<2x64xf32> to vector<1x64xf32>
      %89 = vector.extract_strided_slice %15 {offsets = [1, 0, 0], sizes = [1, 64, 32], strides = [1, 1, 1]} : vector<2x64x32xf32> to vector<1x64x32xf32>
      %90 = vector.shape_cast %89 : vector<1x64x32xf32> to vector<64x32xf32>
      %91 = vector.extract_strided_slice %18 {offsets = [9, 0], sizes = [1, 32], strides = [1, 1]} : vector<10x32xf32> to vector<1x32xf32>
      %92 = vector.extract_strided_slice %18 {offsets = [7, 0], sizes = [1, 32], strides = [1, 1]} : vector<10x32xf32> to vector<1x32xf32>
      %93 = vector.extract_strided_slice %18 {offsets = [8, 0], sizes = [1, 32], strides = [1, 1]} : vector<10x32xf32> to vector<1x32xf32>
      %cst_41 = arith.constant dense<0.000000e+00> : vector<32xf32>
      %94 = vector.multi_reduction <add>, %83, %cst_41 [0] : vector<2x32xf32> to vector<32xf32>
      %95 = vector.shape_cast %94 : vector<32xf32> to vector<1x32xf32>
      %cst_42 = arith.constant 2.000000e+00 : f32
      %96 = vector.broadcast %cst_42 : f32 to vector<1x32xf32>
      %97 = arith.divf %95, %96 : vector<1x32xf32>
      %98 = vector.broadcast %97 : vector<1x32xf32> to vector<2x32xf32>
      %99 = arith.subf %83, %98 : vector<2x32xf32>
      %100 = arith.mulf %99, %99 : vector<2x32xf32>
      %cst_43 = arith.constant dense<0.000000e+00> : vector<32xf32>
      %101 = vector.multi_reduction <add>, %100, %cst_43 [0] : vector<2x32xf32> to vector<32xf32>
      %102 = vector.shape_cast %101 : vector<32xf32> to vector<1x32xf32>
      %cst_44 = arith.constant 2.000000e+00 : f32
      %103 = vector.broadcast %cst_44 : f32 to vector<1x32xf32>
      %104 = arith.divf %102, %103 : vector<1x32xf32>
      %105 = vector.broadcast %97 : vector<1x32xf32> to vector<2x32xf32>
      %106 = arith.subf %83, %105 : vector<2x32xf32>
      %cst_45 = arith.constant 9.99999974E-6 : f32
      %107 = vector.broadcast %cst_45 : f32 to vector<1x32xf32>
      %108 = arith.addf %104, %107 : vector<1x32xf32>
      %109 = math.rsqrt %108 : vector<1x32xf32>
      %110 = vector.broadcast %109 : vector<1x32xf32> to vector<2x32xf32>
      %111 = arith.mulf %106, %110 : vector<2x32xf32>
      %112 = vector.broadcast %84 : vector<1x32xf32> to vector<2x32xf32>
      %113 = arith.mulf %111, %112 : vector<2x32xf32>
      %114 = vector.broadcast %85 : vector<1x32xf32> to vector<2x32xf32>
      %115 = arith.addf %113, %114 : vector<2x32xf32>
      %cst_46 = arith.constant dense<0.000000e+00> : vector<2x64xf32>
      %116 = tpu.matmul %115, %87, %cst_46 {dimension_numbers = #tpu.dot_dimension_numbers<[1], [0], [0], [1], [0, 0, 1, 1], [], []>} : vector<2x32xf32>, vector<32x64xf32>, vector<2x64xf32> -> vector<2x64xf32>
      %117 = vector.broadcast %88 : vector<1x64xf32> to vector<2x64xf32>
      %118 = arith.addf %116, %117 : vector<2x64xf32>
      %cst_47 = arith.constant 0.000000e+00 : f32
      %119 = vector.broadcast %cst_47 : f32 to vector<2x64xf32>
      %120 = arith.maximumf %118, %119 : vector<2x64xf32>
      %cst_48 = arith.constant dense<0.000000e+00> : vector<2x32xf32>
      %121 = tpu.matmul %120, %90, %cst_48 {dimension_numbers = #tpu.dot_dimension_numbers<[1], [0], [0], [1], [0, 0, 1, 1], [], []>} : vector<2x64xf32>, vector<64x32xf32>, vector<2x32xf32> -> vector<2x32xf32>
      %122 = vector.broadcast %91 : vector<1x32xf32> to vector<2x32xf32>
      %123 = arith.addf %121, %122 : vector<2x32xf32>
      %cst_49 = arith.constant dense<0.000000e+00> : vector<32xf32>
      %124 = vector.multi_reduction <add>, %123, %cst_49 [0] : vector<2x32xf32> to vector<32xf32>
      %125 = vector.shape_cast %124 : vector<32xf32> to vector<1x32xf32>
      %cst_50 = arith.constant 2.000000e+00 : f32
      %126 = vector.broadcast %cst_50 : f32 to vector<1x32xf32>
      %127 = arith.divf %125, %126 : vector<1x32xf32>
      %128 = vector.broadcast %127 : vector<1x32xf32> to vector<2x32xf32>
      %129 = arith.subf %123, %128 : vector<2x32xf32>
      %130 = arith.mulf %129, %129 : vector<2x32xf32>
      %cst_51 = arith.constant dense<0.000000e+00> : vector<32xf32>
      %131 = vector.multi_reduction <add>, %130, %cst_51 [0] : vector<2x32xf32> to vector<32xf32>
      %132 = vector.shape_cast %131 : vector<32xf32> to vector<1x32xf32>
      %cst_52 = arith.constant 2.000000e+00 : f32
      %133 = vector.broadcast %cst_52 : f32 to vector<1x32xf32>
      %134 = arith.divf %132, %133 : vector<1x32xf32>
      %135 = vector.broadcast %127 : vector<1x32xf32> to vector<2x32xf32>
      %136 = arith.subf %123, %135 : vector<2x32xf32>
      %cst_53 = arith.constant 9.99999974E-6 : f32
      %137 = vector.broadcast %cst_53 : f32 to vector<1x32xf32>
      %138 = arith.addf %134, %137 : vector<1x32xf32>
      %139 = math.rsqrt %138 : vector<1x32xf32>
      %140 = vector.broadcast %139 : vector<1x32xf32> to vector<2x32xf32>
      %141 = arith.mulf %136, %140 : vector<2x32xf32>
      %142 = vector.broadcast %92 : vector<1x32xf32> to vector<2x32xf32>
      %143 = arith.mulf %141, %142 : vector<2x32xf32>
      %144 = vector.broadcast %93 : vector<1x32xf32> to vector<2x32xf32>
      %145 = arith.addf %143, %144 : vector<2x32xf32>
      %146 = arith.addf %145, %115 : vector<2x32xf32>
      %cst_54 = arith.constant dense<0.000000e+00> : vector<2x16xf32>
      %147 = tpu.matmul %146, %16, %cst_54 {dimension_numbers = #tpu.dot_dimension_numbers<[1], [0], [0], [1], [0, 0, 1, 1], [], []>} : vector<2x32xf32>, vector<32x16xf32>, vector<2x16xf32> -> vector<2x16xf32>
      %148 = vector.extract_strided_slice %20 {offsets = [0, 0], sizes = [1, 16], strides = [1, 1]} : vector<2x16xf32> to vector<1x16xf32>
      %149 = vector.broadcast %148 : vector<1x16xf32> to vector<2x16xf32>
      %150 = arith.addf %147, %149 : vector<2x16xf32>
      %cst_55 = arith.constant 0.000000e+00 : f32
      %151 = vector.broadcast %cst_55 : f32 to vector<2x16xf32>
      %152 = arith.maximumf %150, %151 : vector<2x16xf32>
      %cst_56 = arith.constant dense<0.000000e+00> : vector<2x16xf32>
      %153 = tpu.matmul %152, %17, %cst_56 {dimension_numbers = #tpu.dot_dimension_numbers<[1], [0], [0], [1], [0, 0, 1, 1], [], []>} : vector<2x16xf32>, vector<16x16xf32>, vector<2x16xf32> -> vector<2x16xf32>
      %154 = vector.extract_strided_slice %20 {offsets = [1, 0], sizes = [1, 16], strides = [1, 1]} : vector<2x16xf32> to vector<1x16xf32>
      %155 = vector.broadcast %154 : vector<1x16xf32> to vector<2x16xf32>
      %156 = arith.addf %153, %155 : vector<2x16xf32>
      %c0_57 = arith.constant 0 : index
      %c0_58 = arith.constant 0 : index
      %157 = vector.load %arg9[%c0_57, %c0_58] : memref<2x16xf32, #tpu.memory_space<vmem>>, vector<2x16xf32>
      tpu.vector_store %arg9[%c0_57, %c0_58], %156 {strides = array<i32>} : memref<2x16xf32, #tpu.memory_space<vmem>>, vector<2x16xf32>,
    } else {
    }
    return
  }
  func.func @transform_0(%arg0: i32) -> (i32, i32, i32) {
    %c0_i32 = arith.constant 0 : i32
    %c0_i32_0 = arith.constant 0 : i32
    %c0_i32_1 = arith.constant 0 : i32
    return %c0_i32, %arg0, %c0_i32_0 : i32, i32, i32
  }
  func.func @transform_1(%arg0: i32) -> (i32, i32, i32) {
    %c0_i32 = arith.constant 0 : i32
    %c0_i32_0 = arith.constant 0 : i32
    %c0_i32_1 = arith.constant 0 : i32
    %c0_i32_2 = arith.constant 0 : i32
    return %c0_i32, %c0_i32_0, %c0_i32_1 : i32, i32, i32
  }
  func.func @transform_2(%arg0: i32) -> (i32, i32, i32) {
    %c0_i32 = arith.constant 0 : i32
    %c0_i32_0 = arith.constant 0 : i32
    %c0_i32_1 = arith.constant 0 : i32
    %c0_i32_2 = arith.constant 0 : i32
    return %c0_i32, %c0_i32_0, %c0_i32_1 : i32, i32, i32
  }
  func.func @transform_3(%arg0: i32) -> (i32, i32) {
    %c0_i32 = arith.constant 0 : i32
    %c0_i32_0 = arith.constant 0 : i32
    %c0_i32_1 = arith.constant 0 : i32
    return %c0_i32, %c0_i32_0 : i32, i32
  }
  func.func @transform_4(%arg0: i32) -> (i32, i32) {
    %c0_i32 = arith.constant 0 : i32
    %c0_i32_0 = arith.constant 0 : i32
    %c0_i32_1 = arith.constant 0 : i32
    return %c0_i32, %c0_i32_0 : i32, i32
  }
  func.func @transform_5(%arg0: i32) -> (i32, i32) {
    %c0_i32 = arith.constant 0 : i32
    %c0_i32_0 = arith.constant 0 : i32
    %c0_i32_1 = arith.constant 0 : i32
    return %c0_i32, %c0_i32_0 : i32, i32
  }
  func.func @transform_6(%arg0: i32) -> (i32, i32) {
    %c0_i32 = arith.constant 0 : i32
    %c0_i32_0 = arith.constant 0 : i32
    %c0_i32_1 = arith.constant 0 : i32
    return %c0_i32, %c0_i32_0 : i32, i32
  }
  func.func @transform_7(%arg0: i32) -> (i32, i32) {
    %c0_i32 = arith.constant 0 : i32
    %c0_i32_0 = arith.constant 0 : i32
    %c0_i32_1 = arith.constant 0 : i32
    return %c0_i32, %c0_i32_0 : i32, i32
  }
  func.func @transform_8(%arg0: i32) -> (i32, i32) {
    %c0_i32 = arith.constant 0 : i32
    %c0_i32_0 = arith.constant 0 : i32
    %c0_i32_1 = arith.constant 0 : i32
    return %c0_i32, %c0_i32_0 : i32, i32
  }
}

</mosaic_0001>

<bundles_post_ra>
// kernel: audio_emotion_classifier.1
= control target key start
LH: loop header
LB: loop body
LE: loop exit
PB: predicated region body
PF: predicated region fallthrough
CT: control target
= control target key end

     0   :  { %vm34_vm0 = vcmask 254976   ;;  %v930_v3 = vmov 0.0|0.0   ;;  %v931_v6 = vmov 0.0   ;;  %vm45_vm1 = vcmask 261120   ;;  %s1208_s0 = inlined_call_operand.vmem [shape: f32[2,32,32], index: 0, kind: input, shape index: {}]   ;;  %s1209_s1 = inlined_call_operand.vmem [shape: f32[2,32,64], index: 1, kind: input, shape index: {}]   ;;  %s1210_s2 = inlined_call_operand.vmem [shape: f32[2,64,32], index: 2, kind: input, shape index: {}]   ;;  %s1211_s3 = inlined_call_operand.vmem [shape: f32[32,16], index: 3, kind: input, shape index: {}]   ;;  %s1212_s4 = inlined_call_operand.vmem [shape: f32[16,16], index: 4, kind: input, shape index: {}]   ;;  %s1213_s5 = inlined_call_operand.vmem [shape: f32[10,32], index: 5, kind: input, shape index: {}]   ;;  %s1214_s6 = inlined_call_operand.vmem [shape: f32[2,64], index: 6, kind: input, shape index: {}]   ;;  %s1215_s7 = inlined_call_operand.vmem [shape: f32[2,16], index: 7, kind: input, shape index: {}]   ;;  %s1216_s8 = inlined_call_operand.hbm [shape: f32[2,16], index: 8, kind: output, shape index: {}]  }
   0x1   :  { %v85_v0 = vld [vmem:[%s1209_s1] sm:$0xff]  ;;  %v86_v1 = vld [vmem:[%s1209_s1 + $0x8] sm:$0xff]  ;;  %v87_v2 = vld [vmem:[%s1209_s1 + $0x10] sm:$0xff]  ;;  %849 = vmatprep.subr.bf16.mxu0 %v930_v3  ;;  %35 = vst.msk [vmem:[#allocation2] sm:$0x3] %vm34_vm0, %v931_v6  ;;  %855 = vmatprep.subr.bf16.mxu1 %v930_v3  ;;  %vm932_vm2 = vmmov 0  }
   0x2   :  { %v850_v4 = vpack.c.bf16 %v86_v1, %v85_v0  ;;  %v88_v5 = vld [vmem:[%s1209_s1 + $0x18] sm:$0xff]  ;;  %v37_v7 = vld [vmem:[%s1208_s0] sm:$0xff]  ;;  %v38_v8 = vld [vmem:[%s1208_s0 + $0x8] sm:$0xff]  ;;  %779 = vmatprep.mubr.msk.f32.mxu0 %vm932_vm2, %v931_v6  ;;  %798 = vmatprep.mubr.msk.f32.mxu1 %vm932_vm2, %v931_v6 }
   0x3   :  { %v39_v9 = vld [vmem:[%s1208_s0 + $0x10] sm:$0xff]  ;;  %v40_v10 = vld [vmem:[%s1208_s0 + $0x18] sm:$0xff]  ;;  %v41_v11 = vld [vmem:[%s1208_s0 + $0x20] sm:$0xff]  ;;  %v46_v12 = vsel %vm45_vm1, %v37_v7, 0.0  ;;  %v47_v13 = vsel %vm45_vm1, %v38_v8, 0.0  ;;  %v853_v14 = vpack.c.bf16 %v88_v5, %v87_v2 }
   0x4   :  { %851 = vmatpush3.bf16.msra.mxu0 %v850_v4  ;;  %v42_v15 = vld [vmem:[%s1208_s0 + $0x28] sm:$0xff]  ;;  %v43_v16 = vld [vmem:[%s1208_s0 + $0x30] sm:$0xff]  ;;  %v44_v17 = vld [vmem:[%s1208_s0 + $0x38] sm:$0xff]  ;;  %v48_v18 = vadd.f32 %v47_v13, %v46_v12  ;;  %v49_v19 = vsel %vm45_vm1, %v39_v9, 0.0  ;;  %v59_v20 = vsel %vm45_vm1, %v41_v11, 0.0  ;;  %v51_v21 = vsel %vm45_vm1, %v40_v10, 0.0 }
   0x5   :  { %852 = vmatprep.subr.bf16.mxu0 %v930_v3  ;;  %v60_v22 = vsel %vm45_vm1, %v42_v15, 0.0  ;;  %v62_v23 = vsel %vm45_vm1, %v43_v16, 0.0  ;;  %v93_v24 = vld [vmem:[%s1210_s2] sm:$0xff]  ;;  %v94_v27 = vld [vmem:[%s1210_s2 + $0x8] sm:$0xff]  ;;  %v95_v28 = vld [vmem:[%s1210_s2 + $0x10] sm:$0xff]  ;;  %v64_v30 = vsel %vm45_vm1, %v44_v17, 0.0 }
   0x6   :  { %v50_v25 = vadd.f32 %v49_v19, %v48_v18  ;;  %v61_v26 = vadd.f32 %v60_v22, %v59_v20  ;;  %v96_v29 = vld [vmem:[%s1210_s2 + $0x18] sm:$0xff]  ;;  %v856_v31 = vpack.c.bf16 %v94_v27, %v93_v24 }
   0x8   :  { %854 = vmatpush3.bf16.msra.mxu0 %v853_v14  ;;  %v52_v32 = vadd.f32 %v51_v21, %v50_v25  ;;  %v63_v33 = vadd.f32 %v62_v23, %v61_v26 }
   0x9   :  { %13 = vsyncpa [#allocation4], 0  ;;  %857 = vmatpush3.bf16.msra.mxu1 %v856_v31  ;;  %v859_v34 = vpack.c.bf16 %v96_v29, %v95_v28  ;;  %867 = vmatprep.subr.bf16.mxu0 %v930_v3  ;;  %v97_v37 = vld [vmem:[%s1210_s2 + $0x20] sm:$0xff]  ;;  %v98_v38 = vld [vmem:[%s1210_s2 + $0x28] sm:$0xff]  ;;  %vm74_vm3 = vcmask 1041409   ;;  %v141_v12 = vlaneseq  ;;  %vm233_vm4 = vcmask 523264  }
   0xa   :  { %v53_v35 = vrot.slane %v52_v32, 4  ;;  %v65_v36 = vadd.f32 %v64_v30, %v63_v33  ;;  %858 = vmatprep.subr.bf16.mxu1 %v930_v3  ;;  %v862_v41 = vpack.c.bf16 %v98_v38, %v97_v37  ;;  %v36_v50 = vld [vmem:[#allocation2] sm:$0x3]  ;;  %v99_v24 = vld [vmem:[%s1210_s2 + $0x30] sm:$0xff]  ;;  %v100_v25 = vld [vmem:[%s1210_s2 + $0x38] sm:$0xff]  ;;  %vm639_vm5 = vcmask 130048  }
   0xb   :  { %v1057_v14 = vshrl.u32 %v141_v12, 7  ;;  %v1065_v16 = vld [vmem:[%s1213_s5] sm:$0xff]  ;;  %v865_v26 = vpack.c.bf16 %v100_v25, %v99_v24  ;;  %v92_v37 = vld [vmem:[%s1209_s1 + $0x38] sm:$0xff]  ;;  %s933_s13 = smov [#allocation3]   ;;  %vm713_vm6 = vcmask 123904  }
   0xc   :  { %v54_v39 = vadd.f32 %v53_v35, %v52_v32  ;;  %v66_v40 = vrot.slane %v65_v36, 4  ;;  %v1087_v27 = vld [vmem:[%s1214_s6] sm:$0x3]  ;;  %s721_s14 = sshll.u32 %s933_s13, 4  ;;  %s722_s14 = int_to_ptr.vmem [resolvable:$true] %s721_s14 }
   0xd   :  { %860 = vmatpush3.bf16.msra.mxu1 %v859_v34  ;;  %v1060_v15 = vsub.s32 0, %v1057_v14  ;;  %v1068_v17 = vsub.s32 1, %v1057_v14  ;;  %v89_v33 = vld [vmem:[%s1209_s1 + $0x20] sm:$0xff]  ;;  %v90_v34 = vld [vmem:[%s1209_s1 + $0x28] sm:$0xff]  ;;  %p911_p1 = scmp.lt.s32.totalorder %s722_s14, %s722_s14 }
   0xe   :  { %v55_v42 = vrot.slane %v54_v39, 2  ;;  %v67_v43 = vadd.f32 %v66_v40, %v65_v36  ;;  %861 = vmatprep.subr.bf16.mxu1 %v930_v3  ;;  %v868_v35 = vpack.c.bf16 %v90_v34, %v89_v33  ;;  %v91_v36 = vld [vmem:[%s1209_s1 + $0x30] sm:$0xff]  ;;  %v362_v34 = vsub.s32 5, %v1057_v14 }
   0xf   :  { %v144_v18 = vrot.slane %v1065_v16, %v1060_v15  ;;  %v149_v21 = vrot.slane %v1065_v16, %v1068_v17  ;;  %v154_v28 = vrot.slane %v1087_v27, %v1060_v15  ;;  %v871_v38 = vpack.c.bf16 %v92_v37, %v91_v36 }
  0x10   :  { %v56_v44 = vadd.f32 %v55_v42, %v54_v39  ;;  %v68_v45 = vrot.slane %v67_v43, 2  ;;  %v231_v39 = vsub.s32 4, %v1057_v14  ;;  %v363_v36 = vrot.slane %v1065_v16, %v362_v34 }
  0x11   :  { %863 = vmatpush3.bf16.msra.mxu1 %v862_v41 }
  0x12   :  { %v57_v46 = vrot.slane %v56_v44, 1  ;;  %v69_v47 = vadd.f32 %v68_v45, %v67_v43  ;;  %864 = vmatprep.subr.bf16.mxu1 %v930_v3  ;;  %v232_v40 = vrot.slane %v1065_v16, %v231_v39 }
  0x14   :  { %v58_v48 = vadd.f32 %v57_v46, %v56_v44  ;;  %v70_v49 = vrot.slane %v69_v47, 1 }
  0x15   :  { %866 = vmatpush3.bf16.msra.mxu1 %v865_v26 }
  0x16   :  { %v71_v51 = vadd.f32 %v70_v49, %v69_v47  ;;  %885 = vmatprep.subr.bf16.mxu1 %v930_v3 }
  0x18   :  { %v75_v52 = vsel %vm74_vm3, %v71_v51, %v58_v48 }
  0x19   :  { %v77_v53 = vadd.f32 %v75_v52, %v36_v50 }
  0x1b   :  { %79 = vst.msk [vmem:[#allocation2] sm:$0x3] %vm34_vm0, %v77_v53 }
  0x22   :  { %v83_v54 = vld [vmem:[#allocation2] sm:$0x3] }
  0x23   :  { %v84_v55 = vmul.f32 0.03125, %v83_v54 }
  0x25   :  { %v119_v56 = vsel %vm34_vm0, %v84_v55, 0.0 }
  0x26   :  { %v120_v57 = vrot.slane %v119_v56, 4 }
  0x28   :  { %v121_v58 = vadd.f32 %v120_v57, %v119_v56 }
  0x2a   :  { %v122_v59 = vrot.slane %v121_v58, 2 }
  0x2c   :  { %v123_v60 = vadd.f32 %v122_v59, %v121_v58 }
  0x2e   :  { %v124_v61 = vrot.slane %v123_v60, 1 }
  0x30   :  { %v125_v62 = vadd.f32 %v124_v61, %v123_v60 }
  0x32   :  { %v127_v63 = vmul.f32 0.5, %v125_v62 }
  0x34   :  { %v128_v0 = vsub.f32 %v84_v55, %v127_v63  ;;  %v330_v63 = vsub.s32 2, %v1057_v14 }
  0x36   :  { %v129_v1 = vmul.f32 %v128_v0, %v128_v0 }
  0x38   :  { %v130_v2 = vsel %vm34_vm0, %v129_v1, 0.0  ;;  %v331_v1 = vrot.slane %v1065_v16, %v330_v63 }
  0x39   :  { %v131_v4 = vrot.slane %v130_v2, 4 }
  0x3b   :  { %v132_v5 = vadd.f32 %v131_v4, %v130_v2 }
  0x3d   :  { %v133_v7 = vrot.slane %v132_v5, 2 }
  0x3f   :  { %v134_v8 = vadd.f32 %v133_v7, %v132_v5 }
  0x41   :  { %v135_v9 = vrot.slane %v134_v8, 1 }
  0x43   :  { %v136_v10 = vadd.f32 %v135_v9, %v134_v8 }
  0x45   :  { %v137_v11 = vmul.f32 0.5, %v136_v10 }
  0x47   :  { %v138_v13 = vadd.f32 1e-05, %v137_v11 }
  0x49   :  { %898 = vrsqrt.f32 %v138_v13 }
  0x53   :  { %v899_v19 = vpop.eup %898 }
  0x54   :  { %v140_v20 = vmul.f32 %v899_v19, %v128_v0  ;;  %v335_v0 = vsub.s32 3, %v1057_v14 }
  0x56   :  { %v145_v22 = vmul.f32 %v144_v18, %v140_v20  ;;  %v336_v5 = vrot.slane %v1065_v16, %v335_v0  ;;  %v116_v0 = vld [vmem:[%s1213_s5 + $0x8] sm:$0x3] }
  0x57   :  { %v554_v34 = vrot.slane %v116_v0, %v1060_v15 }
  0x58   :  { %v150_v23 = vadd.f32 %v149_v21, %v145_v22 }
  0x5a   :  { %780 = vmatmul.mubr.msk.f32.vlgmr.msra.gmra.mrb[0].mxu0 %vm45_vm1, %v150_v23 }
  0x5b   :  { %809 = vmatprep.mubr.msk.f32.mxu0 %vm932_vm2, %v931_v6  ;;  %869 = vmatpush3.bf16.msra.mxu0 %v868_v35  ;;  %v367_v35 = vsub.s32 6, %v1057_v14 }
  0x5c   :  { %870 = vmatprep.subr.bf16.mxu0 %v930_v3 }
  0x5d   :  { %v368_v39 = vrot.slane %v1065_v16, %v367_v35 }
  0x5f   :  { %872 = vmatpush3.bf16.msra.mxu0 %v871_v38 }
  0x60   :  { %873 = vmatprep.subr.bf16.mxu0 %v930_v3 }
 0x12d   :  { %v224_v29 = vpop.f32.mrb[0].mxu0 }
 0x12e   :  { %v225_v30 = vadd.f32 %v224_v29, %v154_v28  ;;  %v781_v31 = vpop.f32.mrb[1].mxu0 }
 0x130   :  { %v228_v32 = vmax.f32 %v225_v30, 0.0 }
 0x132   :  { %799 = vmatmul.mubr.msk.f32.vlgmr.msra.gmra.mrb[0].mxu1 %vm233_vm4, %v228_v32 }
 0x133   :  { %839 = vmatprep.mubr.msk.f32.mxu1 %vm932_vm2, %v931_v6 }
 0x205   :  { %v303_v41 = vpop.f32.mrb[0].mxu1 }
 0x206   :  { %v304_v42 = vadd.f32 %v303_v41, %v232_v40  ;;  %v800_v43 = vpop.f32.mrb[1].mxu1  ;;  %v101_v40 = vld [vmem:[%s1210_s2 + $0x40] sm:$0xff]  ;;  %v102_v41 = vld [vmem:[%s1210_s2 + $0x48] sm:$0xff] }
 0x207   :  { %v874_v43 = vpack.c.bf16 %v102_v41, %v101_v40 }
 0x208   :  { %v307_v44 = vsel %vm34_vm0, %v304_v42, 0.0 }
 0x209   :  { %v308_v45 = vrot.slane %v307_v44, 4 }
 0x20b   :  { %v309_v46 = vadd.f32 %v308_v45, %v307_v44  ;;  %v103_v45 = vld [vmem:[%s1210_s2 + $0x50] sm:$0xff] }
 0x20d   :  { %v310_v47 = vrot.slane %v309_v46, 2 }
 0x20f   :  { %v311_v48 = vadd.f32 %v310_v47, %v309_v46  ;;  %v104_v46 = vld [vmem:[%s1210_s2 + $0x58] sm:$0xff] }
 0x210   :  { %v877_v47 = vpack.c.bf16 %v104_v46, %v103_v45 }
 0x211   :  { %v312_v49 = vrot.slane %v311_v48, 1 }
 0x213   :  { %v313_v50 = vadd.f32 %v312_v49, %v311_v48  ;;  %v105_v48 = vld [vmem:[%s1210_s2 + $0x60] sm:$0xff]  ;;  %v106_v49 = vld [vmem:[%s1210_s2 + $0x68] sm:$0xff] }
 0x215   :  { %v314_v51 = vmul.f32 0.5, %v313_v50  ;;  %v880_v50 = vpack.c.bf16 %v106_v49, %v105_v48 }
 0x217   :  { %v315_v52 = vsub.f32 %v304_v42, %v314_v51  ;;  %v107_v51 = vld [vmem:[%s1210_s2 + $0x70] sm:$0xff] }
 0x219   :  { %v316_v53 = vmul.f32 %v315_v52, %v315_v52 }
 0x21b   :  { %v317_v54 = vsel %vm34_vm0, %v316_v53, 0.0 }
 0x21c   :  { %v318_v55 = vrot.slane %v317_v54, 4 }
 0x21e   :  { %v319_v56 = vadd.f32 %v318_v55, %v317_v54  ;;  %v373_v54 = vrot.slane %v1087_v27, %v1068_v17  ;;  %v111_v27 = vld [vmem:[%s1211_s3 + $0x10] sm:$0xff] }
 0x220   :  { %v320_v57 = vrot.slane %v319_v56, 2 }
 0x222   :  { %v321_v58 = vadd.f32 %v320_v57, %v319_v56 }
 0x224   :  { %v322_v59 = vrot.slane %v321_v58, 1 }
 0x226   :  { %v323_v60 = vadd.f32 %v322_v59, %v321_v58  ;;  %v109_v59 = vld [vmem:[%s1211_s3] sm:$0xff] }
 0x228   :  { %v324_v61 = vmul.f32 0.5, %v323_v60  ;;  %v110_v60 = vld [vmem:[%s1211_s3 + $0x8] sm:$0xff] }
 0x22a   :  { %v325_v62 = vadd.f32 1e-05, %v324_v61  ;;  %v886_v61 = vpack.c.bf16 %v110_v60, %v109_v59 }
 0x22c   :  { %900 = vrsqrt.f32 %v325_v62  ;;  %887 = vmatpush3.bf16.msra.mxu1 %v886_v61  ;;  %v112_v62 = vld [vmem:[%s1211_s3 + $0x18] sm:$0xff] }
 0x22d   :  { %888 = vmatprep.subr.bf16.mxu1 %v930_v3  ;;  %v889_v63 = vpack.c.bf16 %v112_v62, %v111_v27 }
 0x230   :  { %890 = vmatpush3.bf16.msra.mxu1 %v889_v63 }
 0x231   :  { %891 = vmatprep.subr.bf16.mxu1 %v930_v3 }
 0x236   :  { %v901_v2 = vpop.eup %900 }
 0x237   :  { %v327_v4 = vmul.f32 %v901_v2, %v315_v52  ;;  %v108_v52 = vld [vmem:[%s1210_s2 + $0x78] sm:$0xff] }
 0x238   :  { %v883_v53 = vpack.c.bf16 %v108_v52, %v107_v51 }
 0x239   :  { %v332_v7 = vmul.f32 %v331_v1, %v327_v4  ;;  %v451_v1 = vrot.slane %v116_v0, %v1068_v17 }
 0x23b   :  { %v337_v8 = vadd.f32 %v336_v5, %v332_v7 }
 0x23d   :  { %v338_v9 = vadd.f32 %v337_v8, %v150_v23 }
 0x23f   :  { %v339_v10 = vsel %vm34_vm0, %v338_v9, 0.0 }
 0x240   :  { %v340_v11 = vrot.slane %v339_v10, 4 }
 0x242   :  { %v341_v12 = vadd.f32 %v340_v11, %v339_v10 }
 0x244   :  { %v342_v13 = vrot.slane %v341_v12, 2 }
 0x246   :  { %v343_v18 = vadd.f32 %v342_v13, %v341_v12 }
 0x248   :  { %v344_v19 = vrot.slane %v343_v18, 1 }
 0x24a   :  { %v345_v20 = vadd.f32 %v344_v19, %v343_v18 }
 0x24c   :  { %v346_v21 = vmul.f32 0.5, %v345_v20 }
 0x24e   :  { %v347_v22 = vsub.f32 %v338_v9, %v346_v21 }
 0x250   :  { %v348_v24 = vmul.f32 %v347_v22, %v347_v22 }
 0x252   :  { %v349_v25 = vsel %vm34_vm0, %v348_v24, 0.0 }
 0x253   :  { %v350_v26 = vrot.slane %v349_v25, 4 }
 0x255   :  { %v351_v28 = vadd.f32 %v350_v26, %v349_v25 }
 0x257   :  { %v352_v29 = vrot.slane %v351_v28, 2 }
 0x259   :  { %v353_v30 = vadd.f32 %v352_v29, %v351_v28 }
 0x25b   :  { %v354_v31 = vrot.slane %v353_v30, 1 }
 0x25d   :  { %v355_v32 = vadd.f32 %v354_v31, %v353_v30  ;;  %v548_v31 = vsub.s32 7, %v1057_v14  ;;  %v114_v14 = vld [vmem:[%s1212_s4 + $0x8] sm:$0xff] }
 0x25f   :  { %v356_v23 = vmul.f32 0.5, %v355_v32  ;;  %v549_v32 = vrot.slane %v1065_v16, %v548_v31 }
 0x261   :  { %v357_v33 = vadd.f32 1e-05, %v356_v23 }
 0x263   :  { %902 = vrsqrt.f32 %v357_v33 }
 0x26d   :  { %v903_v37 = vpop.eup %902 }
 0x26e   :  { %v359_v38 = vmul.f32 %v903_v37, %v347_v22 }
 0x270   :  { %v364_v42 = vmul.f32 %v363_v36, %v359_v38  ;;  %v113_v38 = vld [vmem:[%s1212_s4] sm:$0xff]  ;;  %s906_s4 = scalar_lea.vmem %s722_s14, 32 }
 0x271   :  { %v892_v16 = vpack.c.bf16 %v114_v14, %v113_v38  ;;  %p907_p0 = scmp.ne.s32.totalorder %s722_s14, %s906_s4  ;;  %p912_p2 = scmp.lt.s32.totalorder %s906_s4, %s906_s4 }
 0x272   :  { %v1128_v44 = vadd.f32 %v368_v39, %v364_v42  ;;  %v118_v39 = vld [vmem:[%s1215_s7] sm:$0x3] }
 0x273   :  { %v560_v40 = vrot.slane %v118_v39, %v1060_v15  ;;  %p913_p3 = por %p912_p2, %p911_p1 }
 0x274   :  { %810 = vmatmul.mubr.msk.f32.vlgmr.msra.gmra.mrb[2].mxu0 %vm45_vm1, %v1128_v44 }
 0x275   :  { %875 = vmatpush3.bf16.msra.mxu0 %v874_v43  ;;  %828 = vmatprep.mubr.msk.f32.mxu0 %vm932_vm2, %v931_v6  ;;  %p914_p4 = pnand %p913_p3, %p907_p0 }
 0x276   :  { %876 = vmatprep.subr.bf16.mxu0 %v930_v3 }
 0x279   :  { %878 = vmatpush3.bf16.msra.mxu0 %v877_v47 }
 0x27a   :  { %879 = vmatprep.subr.bf16.mxu0 %v930_v3 }
 0x27d   :  { %881 = vmatpush3.bf16.msra.mxu0 %v880_v50 }
 0x27e   :  { %882 = vmatprep.subr.bf16.mxu0 %v930_v3 }
 0x281   :  { %884 = vmatpush3.bf16.msra.mxu0 %v883_v53 }
 0x347   :  { %v443_v55 = vpop.f32.mrb[2].mxu0 }
 0x348   :  { %v444_v56 = vadd.f32 %v443_v55, %v373_v54  ;;  %v811_v57 = vpop.f32.mrb[3].mxu0 }
 0x34a   :  { %v447_v58 = vmax.f32 %v444_v56, 0.0 }
 0x34c   :  { %829 = vmatmul.mubr.msk.f32.vlgmr.msra.gmra.mrb[4].mxu0 %vm233_vm4, %v447_v58 }
 0x41f   :  { %v521_v2 = vpop.f32.mrb[4].mxu0 }
 0x420   :  { %v522_v4 = vadd.f32 %v521_v2, %v451_v1  ;;  %v830_v5 = vpop.f32.mrb[5].mxu0 }
 0x422   :  { %v525_v7 = vsel %vm34_vm0, %v522_v4, 0.0 }
 0x423   :  { %v526_v8 = vrot.slane %v525_v7, 4 }
 0x425   :  { %v527_v9 = vadd.f32 %v526_v8, %v525_v7 }
 0x427   :  { %v528_v10 = vrot.slane %v527_v9, 2 }
 0x429   :  { %v529_v11 = vadd.f32 %v528_v10, %v527_v9 }
 0x42b   :  { %v530_v12 = vrot.slane %v529_v11, 1 }
 0x42d   :  { %v531_v13 = vadd.f32 %v530_v12, %v529_v11 }
 0x42f   :  { %v532_v18 = vmul.f32 0.5, %v531_v13 }
 0x431   :  { %v533_v19 = vsub.f32 %v522_v4, %v532_v18 }
 0x433   :  { %v534_v3 = vmul.f32 %v533_v19, %v533_v19 }
 0x435   :  { %v535_v20 = vsel %vm34_vm0, %v534_v3, 0.0 }
 0x436   :  { %v536_v21 = vrot.slane %v535_v20, 4 }
 0x438   :  { %v537_v22 = vadd.f32 %v536_v21, %v535_v20 }
 0x43a   :  { %v538_v24 = vrot.slane %v537_v22, 2 }
 0x43c   :  { %v539_v25 = vadd.f32 %v538_v24, %v537_v22 }
 0x43e   :  { %v540_v26 = vrot.slane %v539_v25, 1 }
 0x440   :  { %v541_v28 = vadd.f32 %v540_v26, %v539_v25 }
 0x442   :  { %v542_v29 = vmul.f32 0.5, %v541_v28 }
 0x444   :  { %v543_v30 = vadd.f32 1e-05, %v542_v29 }
 0x446   :  { %904 = vrsqrt.f32 %v543_v30 }
 0x450   :  { %v905_v23 = vpop.eup %904 }
 0x451   :  { %v545_v33 = vmul.f32 %v905_v23, %v533_v19 }
 0x453   :  { %v550_v35 = vmul.f32 %v549_v32, %v545_v33 }
 0x455   :  { %v555_v36 = vadd.f32 %v554_v34, %v550_v35 }
 0x457   :  { %v556_v37 = vadd.f32 %v555_v36, %v1128_v44  ;;  %v638_v44 = vrot.slane %v118_v39, %v1068_v17 }
 0x459   :  { %840 = vmatmul.mubr.msk.f32.vlgmr.msra.gmra.mrb[2].mxu1 %vm45_vm1, %v556_v37 }
 0x45a   :  { %846 = vmatprep.mubr.msk.f32.mxu1 %vm932_vm2, %v931_v6  ;;  %893 = vmatpush3.bf16.msra.mxu1 %v892_v16 }
 0x52c   :  { %v630_v41 = vpop.f32.mrb[2].mxu1 }
 0x52d   :  { %v631_v42 = vadd.f32 %v630_v41, %v560_v40  ;;  %v841_v43 = vpop.f32.mrb[3].mxu1 }
 0x52f   :  { %v634_v6 = vmax.f32 %v631_v42, 0.0 }
 0x531   :  { %847 = vmatmul.mubr.msk.f32.vlgmr.msra.gmra.mrb[4].mxu1 %vm639_vm5, %v634_v6 }
 0x604   :  { %v709_v45 = vpop.f32.mrb[4].mxu1 }
 0x605   :  { %v710_v46 = vadd.f32 %v709_v45, %v638_v44  ;;  %v848_v47 = vpop.f32.mrb[5].mxu1 }
 0x607   :  { %714 = vst.msk [vmem:[#allocation3] sm:$0x3] %vm713_vm6, %v710_v46 }
 0x608   :  { %917 = shalt.err (!%p914_p4)
}
 0x609   :  { %s918_s16 = scalar_lea.hbm %s1216_s8, 32 }
 0x60a   :  { %p919_p5 = scmp.ne.s32.totalorder %s1216_s8, %s918_s16  ;;  %p922_p6 = scmp.lt.u32.totalorder %s918_s16, %s1216_s8 }
 0x60c   :  { %p924_p7 = pnand %p922_p6, %p919_p5 }
 0x60e   :  { %927 = shalt.err (!%p924_p7)
}
 0x60f   :  { %724 = dma.vmem_to_hbm [thread:$0]  %s722_s14, 32, %s1216_s8, [#allocation4]  }
 0x610   :  { %928 = dma.done.wait [#allocation4], 32  }
 0x611   :  { %929 = vsyncadd [#allocation4], 4294967264 }
 0x612   :  { %728 = vsyncpa [#allocation4], 1 }

</bundles_post_ra>
